<compile_context>
chip_gen: v5e
topology: v5e:2x2
jax: 0.10.0
libtpu: 0.0.40
codegen_flags: <defaults>
</compile_context>

<pallas_src>
import functools

import jax
import jax.numpy as jnp
from jax.experimental import pallas as pl
from jax.experimental.pallas import tpu as pltpu


def _temporal_attention_kernel(x_ref, o_ref, *, inv_c):
    # x_ref / o_ref: (C, tT) block -- leading batch dim squeezed away.
    x = x_ref[...]                                              # native dtype
    # Cross-sublane reductions (XLU).  max is exact in the input dtype; the
    # sum accumulates in f32 without materializing a full-tile f32 copy.
    x_max = jnp.max(x, axis=0, keepdims=True).astype(jnp.float32)   # (1, tT)
    x_sum = jnp.sum(x, axis=0, keepdims=True, dtype=jnp.float32)    # (1, tT)
    gate = jax.nn.sigmoid(x_max + x_sum * inv_c)                    # (1, tT) f32
    # Multiply in the input dtype (halves VPU/store traffic for bf16 inputs).
    o_ref[...] = gate.astype(x.dtype) * x                       # bcast over sublanes


def temporal_attention(x, feature_dim=None):
    """x: (B, 1, C, T) array (PyTorch NCHW-style input). Returns (B, C, T)."""
    assert x.ndim == 4 and x.shape[1] == 1, "expected (B, 1, C, T)"
    x3 = jnp.squeeze(x, axis=1)                        # (B, C, T) — plain-JAX glue
    B, C, T = x3.shape
    if feature_dim is not None:
        # PyTorch's repeat(1, 1, feature_dim) only type-checks when C == feature_dim.
        assert C == feature_dim

    itemsize = jnp.dtype(x3.dtype).itemsize

    # Dtype-aware lane-dense T tile: multiple of 128, ~4 MiB working block.
    target_bytes = 4 * 1024 * 1024
    tT = max(128, (target_bytes // max(C * itemsize, 1)) // 128 * 128)
    t_ceil = pl.cdiv(T, 128) * 128
    tT = min(tT, t_ceil)
    # Guarantee >= 2 grid steps so both v7x TensorCores get work.
    while B * pl.cdiv(T, tT) < 2 and tT > 128:
        tT = max(128, (tT // 2) // 128 * 128)
    # TODO(synk): for very large C (>~4K) tile C as a trailing "arbitrary" grid
    # axis with small f32 max/sum partials in VMEM scratch; here tT floors at
    # 128 and the per-block footprint is assumed to fit VMEM.

    grid = (B, pl.cdiv(T, tT))
    kernel = functools.partial(_temporal_attention_kernel, inv_c=1.0 / C)

    block_bytes = C * tT * itemsize
    # Double-buffered input + output blocks plus headroom; cap at 48 MiB so it
    # also fits v7x's 64 MiB physical VMEM.
    vmem_limit = int(min(48 * 1024 * 1024, max(32 * 1024 * 1024, 6 * block_bytes)))

    grid_spec = pltpu.PrefetchScalarGridSpec(
        num_scalar_prefetch=0,
        grid=grid,
        in_specs=[pl.BlockSpec((pl.Squeezed(), C, tT), lambda b, t: (b, 0, t))],
        out_specs=pl.BlockSpec((pl.Squeezed(), C, tT), lambda b, t: (b, 0, t)),
    )

    out = pl.pallas_call(
        kernel,
        out_shape=jax.ShapeDtypeStruct((B, C, T), x3.dtype),
        grid_spec=grid_spec,
        compiler_params=pltpu.CompilerParams(
            dimension_semantics=("parallel", "parallel"),
            vmem_limit_bytes=vmem_limit,
        ),
        cost_estimate=pl.CostEstimate(
            flops=3 * B * C * T,
            transcendentals=B * T,
            bytes_accessed=2 * B * C * T * itemsize,
        ),
    )(x3)
    return out


def _reference(x):
    # Pure-JAX reference mirroring the PyTorch forward exactly.
    x3 = jnp.squeeze(x, axis=1)                        # (B, C, T)
    xt = jnp.transpose(x3, (0, 2, 1))                  # (B, T, C)
    x1 = jnp.max(xt, axis=-1, keepdims=True)           # AdaptiveMaxPool1d(1)
    x2 = jnp.mean(xt, axis=-1, keepdims=True)          # AdaptiveAvgPool1d(1)
    feats = jnp.tile(x1 + x2, (1, 1, x3.shape[1]))     # repeat(1, 1, feature_dim)
    refined = jnp.transpose(jax.nn.sigmoid(feats), (0, 2, 1)) * jnp.transpose(xt, (0, 2, 1))
    return refined                                     # (B, C, T)


if __name__ == "__main__":
    key = jax.random.PRNGKey(0)

    # Case 1: T not a multiple of 128 — exercises the ragged (masked) last block.
    B, C, T = 2, 32, 200
    x = jax.random.normal(key, (B, 1, C, T), dtype=jnp.float32)
    out = jax.block_until_ready(temporal_attention(x, feature_dim=C))
    ref = _reference(x)
    assert out.shape == (B, C, T)
    assert jnp.allclose(out, ref, atol=1e-5, rtol=1e-5), "mismatch vs reference (case 1)"

    # Case 2: lane-aligned T.
    B2, C2, T2 = 2, 16, 128
    x2 = jax.random.normal(jax.random.PRNGKey(1), (B2, 1, C2, T2), dtype=jnp.float32)
    out2 = jax.block_until_ready(temporal_attention(x2, feature_dim=C2))
    ref2 = _reference(x2)
    assert out2.shape == (B2, C2, T2)
    assert jnp.allclose(out2, ref2, atol=1e-5, rtol=1e-5), "mismatch vs reference (case 2)"

    print("KERNEL_OK")
</pallas_src>

<mosaic_0001>
module attributes {stable_mosaic.version = 11 : i64} {
  func.func @_temporal_attention_kernel(%arg0: i32, %arg1: i32, %arg2: memref<1x32x256xf32, #tpu.memory_space<vmem>>, %arg3: memref<1x32x256xf32, #tpu.memory_space<vmem>>) attributes {dimension_semantics = [#tpu.dimension_semantics<parallel>, #tpu.dimension_semantics<parallel>], iteration_bounds = array<i64: 2, 1>, scalar_prefetch = 0 : i64, scratch_operands = 0 : i64, tpu.core_type = #tpu.core_type<tc>, window_params = [{transform_indices = @transform_0, window_bounds = array<i64: 1, 32, 256>}, {transform_indices = @transform_1, window_bounds = array<i64: 1, 32, 256>}]} {
    %c0 = arith.constant 0 : index
    %c0_0 = arith.constant 0 : index
    %c0_1 = arith.constant 0 : index
    %0 = vector.load %arg2[%c0, %c0_0, %c0_1] : memref<1x32x256xf32, #tpu.memory_space<vmem>>, vector<1x32x256xf32>
    %1 = vector.shape_cast %0 : vector<1x32x256xf32> to vector<32x256xf32>
    %cst = arith.constant dense<0xFF800000> : vector<256xf32>
    %2 = vector.multi_reduction <maximumf>, %1, %cst [0] : vector<32x256xf32> to vector<256xf32>
    %3 = vector.shape_cast %2 : vector<256xf32> to vector<1x256xf32>
    %cst_2 = arith.constant dense<0.000000e+00> : vector<256xf32>
    %4 = vector.multi_reduction <add>, %1, %cst_2 [0] : vector<32x256xf32> to vector<256xf32>
    %5 = vector.shape_cast %4 : vector<256xf32> to vector<1x256xf32>
    %cst_3 = arith.constant 3.125000e-02 : f32
    %6 = vector.broadcast %cst_3 : f32 to vector<1x256xf32>
    %7 = arith.mulf %5, %6 : vector<1x256xf32>
    %8 = arith.addf %3, %7 : vector<1x256xf32>
    %9 = arith.negf %8 : vector<1x256xf32>
    %10 = math.exp %9 : vector<1x256xf32>
    %cst_4 = arith.constant 1.000000e+00 : f32
    %11 = vector.broadcast %cst_4 : f32 to vector<1x256xf32>
    %12 = arith.addf %11, %10 : vector<1x256xf32>
    %13 = arith.divf %11, %12 : vector<1x256xf32>
    %14 = vector.broadcast %13 : vector<1x256xf32> to vector<32x256xf32>
    %15 = arith.mulf %14, %1 : vector<32x256xf32>
    %c0_5 = arith.constant 0 : index
    %c0_6 = arith.constant 0 : index
    %c0_7 = arith.constant 0 : index
    %16 = vector.load %arg3[%c0_5, %c0_6, %c0_7] : memref<1x32x256xf32, #tpu.memory_space<vmem>>, vector<1x32x256xf32>
    %17 = vector.shape_cast %16 : vector<1x32x256xf32> to vector<32x256xf32>
    %18 = vector.shape_cast %15 : vector<32x256xf32> to vector<1x32x256xf32>
    tpu.vector_store %arg3[%c0_5, %c0_6, %c0_7], %18 {strides = array<i32>} : memref<1x32x256xf32, #tpu.memory_space<vmem>>, vector<1x32x256xf32>,
    return
  }
  func.func @transform_0(%arg0: i32, %arg1: i32) -> (i32, i32, i32) {
    %c0_i32 = arith.constant 0 : i32
    %c0_i32_0 = arith.constant 0 : i32
    return %arg0, %c0_i32, %arg1 : i32, i32, i32
  }
  func.func @transform_1(%arg0: i32, %arg1: i32) -> (i32, i32, i32) {
    %c0_i32 = arith.constant 0 : i32
    %c0_i32_0 = arith.constant 0 : i32
    return %arg0, %c0_i32, %arg1 : i32, i32, i32
  }
}

</mosaic_0001>

<bundles_post_ra>
// kernel: tpu_custom_call.1
= control target key start
LH: loop header
LB: loop body
LE: loop exit
PB: predicated region body
PF: predicated region fallthrough
CT: control target
= control target key end

     0   :  { %6 = vsyncpa [#allocation3], 0  ;;  %s749_s0 = inlined_call_operand.hbm [shape: f32[2,32,200], index: 0, kind: input, shape index: {}]   ;;  %s750_s1 = inlined_call_operand.hbm [shape: f32[2,32,200], index: 1, kind: output, shape index: {}]  }
   0x1   :  { %8 = vsyncpa [#allocation3 + $0x1], 0 }
   0x2   :  { %9 = vsyncpa [#allocation4], 0 }
   0x3   :  { %11 = vsyncpa [#allocation4 + $0x1], 0  ;;  %s585_s6 = smov 0   ;;  %s587_s7 = smov 0  }
   0x4   :  { %s589_s8 = smov 0   ;;  %s591_s9 = smov 0  }
   0x5   :  { %s593_s10 = smov 0   ;;  %s595_s11 = smov 0  }
   0x6 LB: > { %s364_s12 = sadd.s32 4294967295, %s569_s11   ;;  %s365_s13 = sadd.s32 4294967294, %s569_s11   ;;  %s569_s11 = sphi %s595_s11, %s17_s11   ;;  %s565_s10 = sphi %s593_s10, %s759_s10   ;;  %s561_s9 = sphi %s591_s9, %s758_s9   ;;  %s557_s8 = sphi %s589_s8, %s757_s8   ;;  %s553_s7 = sphi %s587_s7, %s756_s7   ;;  %s549_s6 = sphi %s585_s6, %s755_s6  }
   0x7   : > { %s29_s14 = sadd.s32 1, %s565_s10  ;;  %s38_s15 = sadd.s32 1, %s557_s8 }
   0x8   : > { %p31_p0 = scmp.ge.s32.totalorder %s29_s14, 2  ;;  %p45_p1 = scmp.ne.s32.totalorder %s557_s8, %s553_s7 }
   0x9   : > { %p46_p2 = scmp.eq.s32.totalorder %s569_s11, 0  ;;  %p51_p3 = scmp.ne.s32.totalorder %s553_s7, %s549_s6 }
   0xa   : > { %s761_s14 = smov (%p31_p0, %s29_s14), 0  ;;  %p52_p5 = scmp.eq.s32.totalorder %s364_s12, 0 }
   0xb   : > { %p626_p4 = por %p46_p2, %p45_p1  ;;  %s33_s17 = ssub.s32 %s565_s10, %s761_s14 }
   0xc   : > { %p77_p6 = scmp.eq.s32.totalorder %s364_s12, 1  ;;  %p36_p7 = scmp.eq.s32.totalorder %s33_s17, 0 }
   0xd   : > { %p632_p8 = por %p52_p5, %p51_p3  ;;  %p83_p10 = scmp.eq.s32.totalorder %s365_s13, 1 }
   0xe   : > { %p636_p9 = por %p77_p6, %p45_p1  ;;  %p367_p12 = scmp.ge.s32.totalorder %s569_s11, 2 }
   0xf   : > { %s641_s20 = scalar_select %p36_p7, %s557_s8, %s38_s15  }
  0x10   : > { %p643_p11 = por %p83_p10, %p51_p3  ;;  %p395_p13 = scmp.lt.s32.totalorder %s569_s11, 2 }
  0x11   : > { %s103_s22 = sand.u32 1, %s557_s8   ;;  %s381_s24 = sshll.u32 %s565_s10, 6 }
  0x12   : > { %s368_s23 = sshll.u32 %s103_s22, 6  ;;  %s114_s27 = scalar_lea.hbm %s749_s0, %s381_s24 }
  0x13   : > { %s107_s28 = scalar_lea.vmem [#allocation2], %s368_s23  ;;  %s115_s30 = sshll.u32 %s114_s27, 4  ;;  %s116_s30 = int_to_ptr.hbm [resolvable:$true] %s115_s30 }
  0x14   : > { %s117_s29 = sshll.u32 %s107_s28, 4  ;;  %p388_p0 = pnand %p395_p13, %p626_p4  ;;  %s118_s29 = int_to_ptr.vmem [resolvable:$true] %s117_s29 }
  0x15   : > { %p371_p1 = scmp.ge.s32.totalorder %s569_s11, 1  ;;  %s104_s2 = scalar_lea.sflag [#allocation3], %s103_s22 }
  0x16   : > { %s571_s3 = smov 256   ;;  %s572_s4 = smov 16  }
  0x17   : > { %390 = dma.hbm_to_vmem [thread:$0]  (!%p388_p0), %s116_s30, 1024, %s118_s29, %s104_s2, %s571_s3, %s571_s3, %s572_s4  }
  0x18   : > { %p125_p2 = scmp.lt.s32.totalorder %s569_s11, 3 }
  0x1a   : > { %p126_p3 = pnand %p371_p1, %p125_p2 }
  0x1b   : > { %s659_s5 = sand.u32 (!%p126_p3), 1, %s553_s7  }
  0x1c   : > { %129 = sbr.rel (%p126_p3) target bundleno = 98 (0x62), region = 24  ;;  %s372_s12 = sshll.u32 (!%p126_p3), %s659_s5, 6 }
  0x1d   : > { %s132_s13 = scalar_lea.sflag (!%p126_p3), [#allocation3], %s659_s5  ;;  %s135_s15 = scalar_lea.vmem (!%p126_p3), [#allocation2], %s372_s12 }
  0x21   : > { %540 = dma.done.wait (%p632_p8), %s132_s13, 1024  }
  0x22   : > { %542 = vsyncadd (%p632_p8), %s132_s13, 4294966272  ;;  %v669_v0 = vld [vmem:[%s135_s15] sm:$0xff]  ;;  %v671_v1 = vld [vmem:[%s135_s15 + $0x10] sm:$0xff]  ;;  %s382_s16 = sshll.u32 %s561_s9, 6  ;;  %s154_s23 = scalar_lea.vmem [#allocation5], %s372_s12 }
  0x23   : > { %v673_v2 = vld [vmem:[%s135_s15 + $0x20] sm:$0xff]  ;;  %v675_v3 = vld [vmem:[%s135_s15 + $0x30] sm:$0xff]  ;;  %v183_v5 = vadd.f32 %v671_v1, %v669_v0  ;;  %v681_v6 = vld [vmem:[%s135_s15 + $0x8] sm:$0xff]  ;;  %s273_s22 = scalar_lea.hbm %s750_s1, %s382_s16  ;;  %s274_s9 = sshll.u32 %s154_s23, 4  ;;  %s275_s9 = int_to_ptr.vmem [resolvable:$true] %s274_s9 }
  0x24   : > { %v165_v4 = vmax.f32 %v669_v0, %v673_v2  ;;  %v683_v7 = vld [vmem:[%s135_s15 + $0x18] sm:$0xff]  ;;  %v166_v8 = vmax.f32 %v671_v1, %v675_v3  ;;  %v687_v9 = vld [vmem:[%s135_s15 + $0x28] sm:$0xff]  ;;  %s276_s24 = sshll.u32 %s273_s22, 4  ;;  %s260_s25 = scalar_lea.sflag [#allocation4], %s659_s5  ;;  %s277_s24 = int_to_ptr.hbm [resolvable:$true] %s276_s24 }
  0x25   : > { %v689_v10 = vld [vmem:[%s135_s15 + $0x38] sm:$0xff]  ;;  %v192_v11 = vadd.f32 %v683_v7, %v681_v6  ;;  %v184_v12 = vadd.f32 %v183_v5, %v673_v2  ;;  %v174_v13 = vmax.f32 %v681_v6, %v687_v9  ;;  %s501_s26 = sshra.s32 %s277_s24, 4  ;;  %s507_s30 = scalar_lea.hbm %s750_s1, 128  ;;  %s502_s26 = int_to_ptr.hbm [resolvable:$true] %s501_s26 }
  0x26   : > { %v175_v14 = vmax.f32 %v683_v7, %v689_v10  ;;  %v167_v15 = vmax.f32 %v165_v4, %v166_v8  ;;  %s503_s27 = scalar_lea.hbm %s502_s26, 64  ;;  %p508_p7 = scmp.lt.s32.totalorder %s502_s26, %s750_s1 }
  0x27   : > { %v193_v16 = vadd.f32 %v192_v11, %v687_v9  ;;  %v185_v17 = vadd.f32 %v184_v12, %v675_v3  ;;  %p504_p4 = scmp.ne.s32.totalorder %s502_s26, %s503_s27  ;;  %p509_p8 = scmp.lt.s32.totalorder %s507_s30, %s503_s27 }
  0x28   : > { %v176_v18 = vmax.f32 %v174_v13, %v175_v14  ;;  %v168_v19 = vrot.slane %v167_v15, 4 }
  0x29   : > { %v194_v20 = vadd.f32 %v193_v16, %v689_v10  ;;  %v186_v21 = vrot.slane %v185_v17, 4  ;;  %p505_p5 = pnand %p504_p4, %p636_p9  ;;  %p510_p10 = por %p509_p8, %p508_p7 }
  0x2a   : > { %v177_v22 = vrot.slane %v176_v18, 4  ;;  %v169_v23 = vmax.f32 %v167_v15, %v168_v19 }
  0x2b   : > { %v195_v24 = vrot.slane %v194_v20, 4  ;;  %v187_v25 = vadd.f32 %v186_v21, %v185_v17  ;;  %p506_p6 = pneg %p505_p5 }
  0x2c   : > { %v178_v26 = vmax.f32 %v176_v18, %v177_v22  ;;  %v170_v27 = vrot.slane %v169_v23, 2 }
  0x2d   : > { %v196_v28 = vadd.f32 %v195_v24, %v194_v20  ;;  %v188_v29 = vrot.slane %v187_v25, 2  ;;  %p511_p13 = pnand %p510_p10, %p506_p6 }
  0x2e   : > { %v179_v30 = vrot.slane %v178_v26, 2  ;;  %v171_v31 = vmax.f32 %v169_v23, %v170_v27 }
  0x2f   : > { %v197_v32 = vrot.slane %v196_v28, 2  ;;  %v189_v33 = vadd.f32 %v188_v29, %v187_v25 }
  0x30   : > { %v180_v34 = vmax.f32 %v178_v26, %v179_v30  ;;  %v172_v35 = vrot.slane %v171_v31, 1 }
  0x31   : > { %v198_v36 = vadd.f32 %v197_v32, %v196_v28  ;;  %v190_v37 = vrot.slane %v189_v33, 1 }
  0x32   : > { %v181_v38 = vrot.slane %v180_v34, 1  ;;  %v173_v40 = vmax.f32 %v171_v31, %v172_v35 }
  0x33   : > { %v199_v39 = vrot.slane %v198_v36, 1  ;;  %v191_v41 = vadd.f32 %v190_v37, %v189_v33 }
  0x34   : > { %v182_v42 = vmax.f32 %v180_v34, %v181_v38 }
  0x35   : > { %v200_v43 = vadd.f32 %v199_v39, %v198_v36  ;;  %v201_v44 = vmul.f32 0.03125, %v191_v41 }
  0x37   : > { %v202_v45 = vmul.f32 0.03125, %v200_v43  ;;  %v203_v46 = vadd.f32 %v201_v44, %v173_v40 }
  0x39   : > { %v204_v47 = vadd.f32 %v202_v45, %v182_v42  ;;  %v374_v48 = vmul.f32 -1.442695, %v203_v46 }
  0x3b   : > { %v375_v49 = vmul.f32 -1.442695, %v204_v47  ;;  %449 = vpow2.f32 %v374_v48 }
  0x3d   : > { %451 = vpow2.f32 %v375_v49 }
  0x41   : > { %v450_v50 = vpop.eup %449 }
  0x42   : > { %v211_v52 = vadd.f32 1.0, %v450_v50 }
  0x43   : > { %v452_v51 = vpop.eup %451 }
  0x44   : > { %v212_v53 = vadd.f32 1.0, %v452_v51  ;;  %453 = vrcp.f32 %v211_v52  ;;  %vm218_vm0 = vweird.f32 %v211_v52  ;;  %v224_v57 = vand.u32 2147483648, %v211_v52 }
  0x45   : > { %v222_v60 = vand.u32 2147483647, %v211_v52 }
  0x46   : > { %455 = vrcp.f32 %v212_v53  ;;  %v239_v61 = vand.u32 2147483648, %v212_v53  ;;  %vm233_vm2 = vweird.f32 %v212_v53  ;;  %v237_v63 = vand.u32 2147483647, %v212_v53 }
  0x47   : > { %v225_v5 = vor.u32 1.1754944e-38, %v224_v57  ;;  %vm223_vm5 = vcmp.eq.f32.partialorder %v222_v60, 8.507059e+37 }
  0x48   : > { %v240_v12 = vor.u32 1.1754944e-38, %v239_v61  ;;  %vm238_vm7 = vcmp.eq.f32.partialorder %v237_v63, 8.507059e+37 }
  0x4a   : > { %v454_v54 = vpop.eup %453 }
  0x4b   : > { %v214_v56 = vmul.f32 %v454_v54, %v211_v52  ;;  %vm219_vm1 = vweird.f32 %v454_v54 }
  0x4c   : > { %v456_v55 = vpop.eup %455  ;;  %vm220_vm4 = vmor %vm218_vm0, %vm219_vm1 }
  0x4d   : > { %v229_v58 = vmul.f32 %v456_v55, %v212_v53  ;;  %v215_v59 = vsub.f32 1.0, %v214_v56  ;;  %vm234_vm3 = vweird.f32 %v456_v55 }
  0x4e   : > { %vm235_vm6 = vmor %vm233_vm2, %vm234_vm3 }
  0x4f   : > { %v230_v62 = vsub.f32 1.0, %v229_v58  ;;  %v216_v4 = vmul.f32 %v454_v54, %v215_v59 }
  0x51   : > { %v231_v8 = vmul.f32 %v456_v55, %v230_v62  ;;  %v217_v11 = vadd.f32 %v454_v54, %v216_v4 }
  0x53   : > { %v232_v13 = vadd.f32 %v456_v55, %v231_v8  ;;  %v221_v14 = vsel %vm220_vm4, %v454_v54, %v217_v11 }
  0x54   : > { %v226_v15 = vsel %vm223_vm5, %v225_v5, %v221_v14 }
  0x55   : > { %v236_v16 = vsel %vm235_vm6, %v456_v55, %v232_v13  ;;  %v243_v17 = vmul.f32 %v226_v15, %v669_v0  ;;  %v245_v19 = vmul.f32 %v226_v15, %v671_v1  ;;  %v247_v22 = vmul.f32 %v226_v15, %v673_v2 }
  0x56   : > { %v241_v18 = vsel %vm238_vm7, %v240_v12, %v236_v16  ;;  %v249_v1 = vmul.f32 %v226_v15, %v675_v3 }
  0x57   : > { %v244_v20 = vmul.f32 %v241_v18, %v681_v6  ;;  %v246_v21 = vmul.f32 %v241_v18, %v683_v7  ;;  %251 = vst [vmem:[%s154_s23] sm:$0xff] %v243_v17  ;;  %v248_v0 = vmul.f32 %v241_v18, %v687_v9  ;;  %v250_v6 = vmul.f32 %v241_v18, %v689_v10 }
  0x58   : > { %253 = vst [vmem:[%s154_s23 + $0x10] sm:$0xff] %v245_v19 }
  0x59   : > { %252 = vst [vmem:[%s154_s23 + $0x8] sm:$0xff] %v244_v20 }
  0x5a   : > { %254 = vst [vmem:[%s154_s23 + $0x18] sm:$0xff] %v246_v21 }
  0x5b   : > { %255 = vst [vmem:[%s154_s23 + $0x20] sm:$0xff] %v247_v22 }
  0x5c   : > { %256 = vst [vmem:[%s154_s23 + $0x28] sm:$0xff] %v248_v0 }
  0x5d   : > { %257 = vst [vmem:[%s154_s23 + $0x30] sm:$0xff] %v249_v1 }
  0x5e   : > { %258 = vst [vmem:[%s154_s23 + $0x38] sm:$0xff] %v250_v6 }
  0x5f   : > { %514 = shalt.err (!%p511_p13)
}
  0x60   : > { %s573_s4 = smov 256   ;;  %s574_s5 = smov 16  }
  0x61   : > { %385 = dma.vmem_to_hbm [thread:$0]  (%p636_p9), %s275_s9, 1024, %s277_s24, %s260_s25, %s573_s4, %s573_s4, %s574_s5  }
  0x62 PF: > { %s291_s12 = sand.u32 1, %s549_s6   ;;  %p392_p0 = pnand %p367_p12, %p643_p11 }
  0x63   : > { %s292_s13 = scalar_lea.sflag [#allocation4], %s291_s12 }
  0x64   : > { %p393_p1 = pneg %p392_p0 }
  0x66   : > { %544 = dma.done.wait (%p393_p1), %s292_s13, 1024  }
  0x67   : > { %546 = vsyncadd (%p393_p1), %s292_s13, 4294966272  ;;  %s17_s11 = sadd.s32 1, %s569_s11   ;;  %s755_s6 = smov %s553_s7 }
  0x68   : > { %p14_p2 = scmp.ge.s32.totalorder %s17_s11, 4   ;;  %s756_s7 = smov %s557_s8 }
  0x69   : > { %s757_s8 = smov %s641_s20  ;;  %s758_s9 = smov %s565_s10 }
  0x6a   : > { %s759_s10 = smov %s761_s14  ;;  %16 = sbr.rel (!%p14_p2) target bundleno = 6 (0x6), region = 69 }
  0x6f   :  { %298 = vsyncpa [#allocation3], 1 }
  0x70   :  { %300 = vsyncpa [#allocation3 + $0x1], 1 }
  0x71   :  { %301 = vsyncpa [#allocation4], 1 }
  0x72   :  { %303 = vsyncpa [#allocation4 + $0x1], 1 }

</bundles_post_ra>
